<compile_context>
chip_gen: v7x
topology: tpu7x:2x2x1
jax: 0.10.0
libtpu: 0.0.40
codegen_flags: <defaults>
</compile_context>

<pallas_src>
import jax
import jax.numpy as jnp
from jax.experimental import pallas as pl
from jax.experimental.pallas import tpu as pltpu


def _round_up(x, m):
    return ((x + m - 1) // m) * m


def _round_down(x, m):
    return (x // m) * m


def _pick_tk(K, tk_max):
    """K tile: multiple of 128; prefer one dividing K exactly (no K pad)."""
    cap = max(128, _round_down(tk_max, 128))
    if K % 128 == 0:
        t = min(cap, K)
        while t >= 128:
            if K % t == 0:
                return t, K
            t -= 128
    K_pad = _round_up(K, 128)
    t = min(cap, K_pad)
    while K_pad % t != 0:
        t -= 128
    return t, K_pad


def _pick_tm(B, tm_max):
    """Row tile: multiple of 16 when tiling (bf16 sublane packing), else the
    full row extent.  Prefer >= 2 row tiles so v7x's two TensorCores both get
    work on the 'parallel' axis."""
    if B % 8 == 0 and B <= tm_max:
        if B >= 32 and (B // 2) % 16 == 0:
            return B // 2, B           # two row tiles, no pad
        return B, B                    # single tile, no pad
    tm = min(tm_max, _round_up(B, 16))
    return tm, _round_up(B, tm)


def _make_kernel(wb_resident, tk):
    """Grid = (row tiles, backbone-K tiles).  K is the reduction axis."""

    def kernel(imgs_ref, wb_ref, w1_ref, w2_ref, rot_ref, h_ref, z_ref):
        k_step = pl.program_id(1)

        @pl.when(k_step == 0)
        def _():
            h_ref[...] = jnp.zeros_like(h_ref)

        # cast the f32 image tile to bf16 right before the MXU
        x = imgs_ref[...].astype(jnp.bfloat16)
        if wb_resident:
            k0 = pl.multiple_of(k_step * tk, tk)
            wb_tile = wb_ref[pl.ds(k0, tk), :]
        else:
            wb_tile = wb_ref[...]

        # accumulate directly into the VMEM-resident h output block
        h_ref[...] += jnp.dot(x, wb_tile, preferred_element_type=jnp.float32)

        @pl.when(k_step == pl.num_programs(1) - 1)
        def _():
            # backbone ReLU (backbone.fc == Identity), applied in place
            h = jnp.maximum(h_ref[...], 0.0)
            h_ref[...] = h

            # projector: Linear(no bias) -> ReLU -> Linear(no bias)
            z1 = jnp.maximum(
                jnp.dot(h.astype(jnp.bfloat16), w1_ref[...],
                        preferred_element_type=jnp.float32), 0.0)
            z = jnp.dot(z1.astype(jnp.bfloat16), w2_ref[...],
                        preferred_element_type=jnp.float32)   # (tm, 3*kp) f32

            # fused rotation: z_out[i] = sum_j rot[:, 3i+j] * z_chunk[j]
            # rot holds (R_rel^T @ R_inv^T) flattened row-major in lanes 0..8.
            rot = rot_ref[...]
            kp = z.shape[1] // 3
            for i in range(3):
                row = rot[:, 3 * i:3 * i + 1] * z[:, 0:kp]
                for j in range(1, 3):
                    row = row + rot[:, 3 * i + j:3 * i + j + 1] * z[:, j * kp:(j + 1) * kp]
                z_ref[:, i * kp:(i + 1) * kp] = row

    return kernel


def gazeclr_forward(data_dict, params, *, tm_max=512, tk_max=2048,
                    wb_resident_bytes=8 * 1024 * 1024):
    imgs = data_dict["img_a"]                                     # (b, n, c, h, w) f32
    R_inv_gaze = data_dict["face_R"]                              # (b, n, 3, 3)
    R_rel_cam = data_dict["camera_transformation"][:, :, :3, :3]  # (b, n, 3, 3)

    b, n, c, h, w = imgs.shape
    assert R_inv_gaze.shape == (b, n, 3, 3)
    assert R_rel_cam.shape == (b, n, 3, 3)
    B = b * n
    K = c * h * w

    wb, w1, w2 = params["wb"], params["w1"], params["w2"]
    dim_mlp = wb.shape[1]
    proj_dim = w1.shape[1]
    out_dim = w2.shape[1]
    assert out_dim % 3 == 0
    k_out = out_dim // 3

    # lane-dense padded feature sizes (multiples of 128)
    dim_mlp_pad = _round_up(dim_mlp, 128)
    proj_pad = _round_up(proj_dim, 128)
    kp = _round_up(k_out, 128)          # each of the 3 rotation chunks
    out_pad = 3 * kp

    tk, K_pad = _pick_tk(K, tk_max)
    tm, B_pad = _pick_tm(B, tm_max)

    # image stream stays f32: no wrapper-side cast; pad only if unavoidable
    imgs_flat = imgs.reshape(B, K)
    if B_pad != B or K_pad != K:
        imgs_flat = jnp.pad(imgs_flat, ((0, B_pad - B), (0, K_pad - K)))

    # weights: bf16, zero-padded to lane-dense shapes (tiny vs. the image stream)
    wb_p = jnp.zeros((K_pad, dim_mlp_pad), jnp.bfloat16)
    wb_p = wb_p.at[:K, :dim_mlp].set(wb.astype(jnp.bfloat16))
    w1_p = jnp.zeros((dim_mlp_pad, proj_pad), jnp.bfloat16)
    w1_p = w1_p.at[:dim_mlp, :proj_dim].set(w1.astype(jnp.bfloat16))
    # w2 padded per rotation chunk so each chunk is a lane-aligned 128 slab
    w2_p = jnp.zeros((proj_pad, out_pad), jnp.bfloat16)
    for i in range(3):
        w2_p = w2_p.at[:proj_dim, i * kp:i * kp + k_out].set(
            w2[:, i * k_out:(i + 1) * k_out].astype(jnp.bfloat16))

    # fold the two rotations of forward_pass:
    #   bmm(R_rel^T, bmm(R_inv^T, z)) == bmm(R_rel^T @ R_inv^T, z)
    r1 = jnp.transpose(R_inv_gaze.reshape(B, 3, 3), (0, 2, 1)).astype(jnp.float32)
    r2 = jnp.transpose(R_rel_cam.reshape(B, 3, 3), (0, 2, 1)).astype(jnp.float32)
    rot = jnp.einsum("bij,bjk->bik", r2, r1).reshape(B, 9)
    rot = jnp.pad(rot, ((0, B_pad - B), (0, 128 - 9)))            # lane-dense (B_pad, 128)

    # backbone-weight residency: single-DMA resident block when small
    # (v5e/v6e win); large wb stays streamed (fits v7x's 64 MiB VMEM), with a
    # large tm amortizing the per-row-tile re-stream.
    wb_bytes = K_pad * dim_mlp_pad * 2
    wb_resident = wb_bytes <= wb_resident_bytes
    if wb_resident:
        wb_spec = pl.BlockSpec((K_pad, dim_mlp_pad), lambda i, k: (0, 0))
    else:
        wb_spec = pl.BlockSpec((tk, dim_mlp_pad), lambda i, k: (k, 0))

    grid = (B_pad // tm, K_pad // tk)

    h_pad, z_pad = pl.pallas_call(
        _make_kernel(wb_resident, tk),
        out_shape=(jax.ShapeDtypeStruct((B_pad, dim_mlp_pad), jnp.float32),
                   jax.ShapeDtypeStruct((B_pad, out_pad), jnp.float32)),
        grid_spec=pltpu.PrefetchScalarGridSpec(
            num_scalar_prefetch=0,
            grid=grid,
            in_specs=[
                pl.BlockSpec((tm, tk), lambda i, k: (i, k)),                 # f32 image tile
                wb_spec,                                                     # backbone W
                pl.BlockSpec((dim_mlp_pad, proj_pad), lambda i, k: (0, 0)),  # proj W1 (resident)
                pl.BlockSpec((proj_pad, out_pad), lambda i, k: (0, 0)),      # proj W2 (resident)
                pl.BlockSpec((tm, 128), lambda i, k: (i, 0)),                # fused rotation
            ],
            out_specs=(pl.BlockSpec((tm, dim_mlp_pad), lambda i, k: (i, 0)),
                       pl.BlockSpec((tm, out_pad), lambda i, k: (i, 0))),
        ),
        compiler_params=pltpu.CompilerParams(
            dimension_semantics=("parallel", "arbitrary"),
            vmem_limit_bytes=48 * 1024 * 1024,
        ),
    )(imgs_flat, wb_p, w1_p, w2_p, rot)

    h_out = h_pad[:B, :dim_mlp].reshape(b, n, dim_mlp)
    z_out = jnp.concatenate(
        [z_pad[:B, i * kp:i * kp + k_out] for i in range(3)], axis=1
    ).reshape(b, n, out_dim)
    return {"feat": h_out, "feat_proj": z_out}


def _reference_forward(data_dict, params):
    """Pure-JAX reference with the same bf16-stream / f32-accumulate recipe."""
    imgs = data_dict["img_a"]
    R_inv = data_dict["face_R"]
    R_rel = data_dict["camera_transformation"][:, :, :3, :3]
    b, n, c, h, w = imgs.shape
    B = b * n
    x = imgs.reshape(B, c * h * w).astype(jnp.bfloat16)
    wb = params["wb"].astype(jnp.bfloat16)
    w1 = params["w1"].astype(jnp.bfloat16)
    w2 = params["w2"].astype(jnp.bfloat16)
    h_i = jnp.maximum(jnp.dot(x, wb, preferred_element_type=jnp.float32), 0.0)
    z1 = jnp.maximum(jnp.dot(h_i.astype(jnp.bfloat16), w1,
                             preferred_element_type=jnp.float32), 0.0)
    z = jnp.dot(z1.astype(jnp.bfloat16), w2, preferred_element_type=jnp.float32)
    z = z.reshape(B, 3, -1)
    r1 = jnp.transpose(R_inv.reshape(B, 3, 3), (0, 2, 1)).astype(jnp.float32)
    r2 = jnp.transpose(R_rel.reshape(B, 3, 3), (0, 2, 1)).astype(jnp.float32)
    z = jnp.einsum("bij,bjk->bik", r1, z)
    z = jnp.einsum("bij,bjk->bik", r2, z)
    return {"feat": h_i.reshape(b, n, -1), "feat_proj": z.reshape(b, n, -1)}


if __name__ == "__main__":
    # Small shapes consistent with the module's forward:
    b, n, c, h, w = 2, 4, 4, 16, 16          # img_a: (b, n, c, h, w); K = 1024
    dim_mlp = 32                              # backbone.fc.in_features
    projection_dim = 16                       # config.projection_dim
    out_dim = 12                              # config.model.out_dim (divisible by 3)

    key = jax.random.PRNGKey(0)
    k_img, k_r1, k_cam, k_wb, k_w1, k_w2 = jax.random.split(key, 6)

    data_dict = {
        "img_a": jax.random.normal(k_img, (b, n, c, h, w), dtype=jnp.float32),
        "face_R": jax.random.normal(k_r1, (b, n, 3, 3), dtype=jnp.float32),
        "camera_transformation": jax.random.normal(k_cam, (b, n, 4, 4),
                                                   dtype=jnp.float32),
    }

    params = {
        "wb": 0.02 * jax.random.normal(k_wb, (c * h * w, dim_mlp), dtype=jnp.float32),
        "w1": 0.1 * jax.random.normal(k_w1, (dim_mlp, projection_dim), dtype=jnp.float32),
        "w2": 0.1 * jax.random.normal(k_w2, (projection_dim, out_dim), dtype=jnp.float32),
    }

    out = gazeclr_forward(data_dict, params)
    jax.block_until_ready(out)

    ref = _reference_forward(data_dict, params)
    assert out["feat"].shape == (b, n, dim_mlp)
    assert out["feat_proj"].shape == (b, n, out_dim)
    assert jnp.allclose(out["feat"], ref["feat"], atol=2e-2, rtol=2e-2)
    assert jnp.allclose(out["feat_proj"], ref["feat_proj"], atol=2e-2, rtol=2e-2)

    print("KERNEL_OK")
</pallas_src>

<mosaic_0001>
module attributes {stable_mosaic.version = 11 : i64} {
  func.func @kernel(%arg0: i32, %arg1: i32, %arg2: memref<8x1024xf32, #tpu.memory_space<vmem>>, %arg3: memref<1024x128xbf16, #tpu.memory_space<vmem>>, %arg4: memref<128x128xbf16, #tpu.memory_space<vmem>>, %arg5: memref<128x384xbf16, #tpu.memory_space<vmem>>, %arg6: memref<8x128xf32, #tpu.memory_space<vmem>>, %arg7: memref<8x128xf32, #tpu.memory_space<vmem>>, %arg8: memref<8x384xf32, #tpu.memory_space<vmem>>) attributes {dimension_semantics = [#tpu.dimension_semantics<parallel>, #tpu.dimension_semantics<arbitrary>], iteration_bounds = array<i64: 1, 1>, scalar_prefetch = 0 : i64, scratch_operands = 0 : i64, tpu.core_type = #tpu.core_type<tc>, window_params = [{transform_indices = @transform_0, window_bounds = array<i64: 8, 1024>}, {pipeline_mode = #tpu.pipeline_mode<synchronous>, transform_indices = @transform_1, window_bounds = array<i64: 1024, 128>}, {pipeline_mode = #tpu.pipeline_mode<synchronous>, transform_indices = @transform_2, window_bounds = array<i64: 128, 128>}, {pipeline_mode = #tpu.pipeline_mode<synchronous>, transform_indices = @transform_3, window_bounds = array<i64: 128, 384>}, {transform_indices = @transform_4, window_bounds = array<i64: 8, 128>}, {transform_indices = @transform_5, window_bounds = array<i64: 8, 128>}, {transform_indices = @transform_6, window_bounds = array<i64: 8, 384>}]} {
    %c0_i32 = arith.constant 0 : i32
    %0 = arith.cmpi eq, %arg1, %c0_i32 : i32
    %1 = arith.extui %0 : i1 to i32
    %c0_i32_0 = arith.constant 0 : i32
    %2 = arith.cmpi ne, %1, %c0_i32_0 : i32
    scf.if %2 {
      %cst_9 = arith.constant 0.000000e+00 : f32
      %16 = vector.broadcast %cst_9 : f32 to vector<8x128xf32>
      %c0_10 = arith.constant 0 : index
      %c0_11 = arith.constant 0 : index
      %17 = vector.load %arg7[%c0_10, %c0_11] : memref<8x128xf32, #tpu.memory_space<vmem>>, vector<8x128xf32>
      tpu.vector_store %arg7[%c0_10, %c0_11], %16 {strides = array<i32>} : memref<8x128xf32, #tpu.memory_space<vmem>>, vector<8x128xf32>,
    } else {
    }
    %c0 = arith.constant 0 : index
    %c0_1 = arith.constant 0 : index
    %3 = vector.load %arg2[%c0, %c0_1] : memref<8x1024xf32, #tpu.memory_space<vmem>>, vector<8x1024xf32>
    %4 = arith.truncf %3 : vector<8x1024xf32> to vector<8x1024xbf16>
    %c1024_i32 = arith.constant 1024 : i32
    %5 = arith.muli %arg1, %c1024_i32 : i32
    %6 = tpu.assume_multiple %5, 1024 : i32
    %7 = arith.index_cast %6 : i32 to index
    %c0_2 = arith.constant 0 : index
    %8 = vector.load %arg3[%7, %c0_2] : memref<1024x128xbf16, #tpu.memory_space<vmem>>, vector<1024x128xbf16>
    %c0_3 = arith.constant 0 : index
    %c0_4 = arith.constant 0 : index
    %9 = vector.load %arg7[%c0_3, %c0_4] : memref<8x128xf32, #tpu.memory_space<vmem>>, vector<8x128xf32>
    %cst = arith.constant dense<0.000000e+00> : vector<8x128xf32>
    %10 = tpu.matmul %4, %8, %cst {dimension_numbers = #tpu.dot_dimension_numbers<[1], [0], [0], [1], [0, 0, 1, 1], [], []>} : vector<8x1024xbf16>, vector<1024x128xbf16>, vector<8x128xf32> -> vector<8x128xf32>
    %11 = arith.addf %9, %10 : vector<8x128xf32>
    %c0_5 = arith.constant 0 : index
    %c0_6 = arith.constant 0 : index
    %12 = vector.load %arg7[%c0_5, %c0_6] : memref<8x128xf32, #tpu.memory_space<vmem>>, vector<8x128xf32>
    tpu.vector_store %arg7[%c0_5, %c0_6], %11 {strides = array<i32>} : memref<8x128xf32, #tpu.memory_space<vmem>>, vector<8x128xf32>,
    %c0_i32_7 = arith.constant 0 : i32
    %13 = arith.cmpi eq, %arg1, %c0_i32_7 : i32
    %14 = arith.extui %13 : i1 to i32
    %c0_i32_8 = arith.constant 0 : i32
    %15 = arith.cmpi ne, %14, %c0_i32_8 : i32
    scf.if %15 {
      %c0_9 = arith.constant 0 : index
      %c0_10 = arith.constant 0 : index
      %16 = vector.load %arg7[%c0_9, %c0_10] : memref<8x128xf32, #tpu.memory_space<vmem>>, vector<8x128xf32>
      %cst_11 = arith.constant 0.000000e+00 : f32
      %17 = vector.broadcast %cst_11 : f32 to vector<8x128xf32>
      %18 = arith.maximumf %16, %17 : vector<8x128xf32>
      %c0_12 = arith.constant 0 : index
      %c0_13 = arith.constant 0 : index
      %19 = vector.load %arg7[%c0_12, %c0_13] : memref<8x128xf32, #tpu.memory_space<vmem>>, vector<8x128xf32>
      tpu.vector_store %arg7[%c0_12, %c0_13], %18 {strides = array<i32>} : memref<8x128xf32, #tpu.memory_space<vmem>>, vector<8x128xf32>,
      %20 = arith.truncf %18 : vector<8x128xf32> to vector<8x128xbf16>
      %c0_14 = arith.constant 0 : index
      %c0_15 = arith.constant 0 : index
      %21 = vector.load %arg4[%c0_14, %c0_15] : memref<128x128xbf16, #tpu.memory_space<vmem>>, vector<128x128xbf16>
      %cst_16 = arith.constant dense<0.000000e+00> : vector<8x128xf32>
      %22 = tpu.matmul %20, %21, %cst_16 {dimension_numbers = #tpu.dot_dimension_numbers<[1], [0], [0], [1], [0, 0, 1, 1], [], []>} : vector<8x128xbf16>, vector<128x128xbf16>, vector<8x128xf32> -> vector<8x128xf32>
      %cst_17 = arith.constant 0.000000e+00 : f32
      %23 = vector.broadcast %cst_17 : f32 to vector<8x128xf32>
      %24 = arith.maximumf %22, %23 : vector<8x128xf32>
      %25 = arith.truncf %24 : vector<8x128xf32> to vector<8x128xbf16>
      %c0_18 = arith.constant 0 : index
      %c0_19 = arith.constant 0 : index
      %26 = vector.load %arg5[%c0_18, %c0_19] : memref<128x384xbf16, #tpu.memory_space<vmem>>, vector<128x384xbf16>
      %cst_20 = arith.constant dense<0.000000e+00> : vector<8x384xf32>
      %27 = tpu.matmul %25, %26, %cst_20 {dimension_numbers = #tpu.dot_dimension_numbers<[1], [0], [0], [1], [0, 0, 1, 1], [], []>} : vector<8x128xbf16>, vector<128x384xbf16>, vector<8x384xf32> -> vector<8x384xf32>
      %c0_21 = arith.constant 0 : index
      %c0_22 = arith.constant 0 : index
      %28 = vector.load %arg6[%c0_21, %c0_22] : memref<8x128xf32, #tpu.memory_space<vmem>>, vector<8x128xf32>
      %29 = vector.extract_strided_slice %28 {offsets = [0, 0], sizes = [8, 1], strides = [1, 1]} : vector<8x128xf32> to vector<8x1xf32>
      %30 = vector.extract_strided_slice %27 {offsets = [0, 0], sizes = [8, 128], strides = [1, 1]} : vector<8x384xf32> to vector<8x128xf32>
      %31 = vector.broadcast %29 : vector<8x1xf32> to vector<8x128xf32>
      %32 = arith.mulf %31, %30 : vector<8x128xf32>
      %33 = vector.extract_strided_slice %28 {offsets = [0, 1], sizes = [8, 1], strides = [1, 1]} : vector<8x128xf32> to vector<8x1xf32>
      %34 = vector.extract_strided_slice %27 {offsets = [0, 128], sizes = [8, 128], strides = [1, 1]} : vector<8x384xf32> to vector<8x128xf32>
      %35 = vector.broadcast %33 : vector<8x1xf32> to vector<8x128xf32>
      %36 = arith.mulf %35, %34 : vector<8x128xf32>
      %37 = arith.addf %32, %36 : vector<8x128xf32>
      %38 = vector.extract_strided_slice %28 {offsets = [0, 2], sizes = [8, 1], strides = [1, 1]} : vector<8x128xf32> to vector<8x1xf32>
      %39 = vector.extract_strided_slice %27 {offsets = [0, 256], sizes = [8, 128], strides = [1, 1]} : vector<8x384xf32> to vector<8x128xf32>
      %40 = vector.broadcast %38 : vector<8x1xf32> to vector<8x128xf32>
      %41 = arith.mulf %40, %39 : vector<8x128xf32>
      %42 = arith.addf %37, %41 : vector<8x128xf32>
      %c0_23 = arith.constant 0 : index
      %c0_24 = arith.constant 0 : index
      %43 = vector.load %arg8[%c0_23, %c0_24] : memref<8x384xf32, #tpu.memory_space<vmem>>, vector<8x128xf32>
      tpu.vector_store %arg8[%c0_23, %c0_24], %42 {strides = array<i32>} : memref<8x384xf32, #tpu.memory_space<vmem>>, vector<8x128xf32>,
      %44 = vector.extract_strided_slice %28 {offsets = [0, 3], sizes = [8, 1], strides = [1, 1]} : vector<8x128xf32> to vector<8x1xf32>
      %45 = vector.extract_strided_slice %27 {offsets = [0, 0], sizes = [8, 128], strides = [1, 1]} : vector<8x384xf32> to vector<8x128xf32>
      %46 = vector.broadcast %44 : vector<8x1xf32> to vector<8x128xf32>
      %47 = arith.mulf %46, %45 : vector<8x128xf32>
      %48 = vector.extract_strided_slice %28 {offsets = [0, 4], sizes = [8, 1], strides = [1, 1]} : vector<8x128xf32> to vector<8x1xf32>
      %49 = vector.extract_strided_slice %27 {offsets = [0, 128], sizes = [8, 128], strides = [1, 1]} : vector<8x384xf32> to vector<8x128xf32>
      %50 = vector.broadcast %48 : vector<8x1xf32> to vector<8x128xf32>
      %51 = arith.mulf %50, %49 : vector<8x128xf32>
      %52 = arith.addf %47, %51 : vector<8x128xf32>
      %53 = vector.extract_strided_slice %28 {offsets = [0, 5], sizes = [8, 1], strides = [1, 1]} : vector<8x128xf32> to vector<8x1xf32>
      %54 = vector.extract_strided_slice %27 {offsets = [0, 256], sizes = [8, 128], strides = [1, 1]} : vector<8x384xf32> to vector<8x128xf32>
      %55 = vector.broadcast %53 : vector<8x1xf32> to vector<8x128xf32>
      %56 = arith.mulf %55, %54 : vector<8x128xf32>
      %57 = arith.addf %52, %56 : vector<8x128xf32>
      %c0_25 = arith.constant 0 : index
      %c128 = arith.constant 128 : index
      %58 = vector.load %arg8[%c0_25, %c128] : memref<8x384xf32, #tpu.memory_space<vmem>>, vector<8x128xf32>
      tpu.vector_store %arg8[%c0_25, %c128], %57 {strides = array<i32>} : memref<8x384xf32, #tpu.memory_space<vmem>>, vector<8x128xf32>,
      %59 = vector.extract_strided_slice %28 {offsets = [0, 6], sizes = [8, 1], strides = [1, 1]} : vector<8x128xf32> to vector<8x1xf32>
      %60 = vector.extract_strided_slice %27 {offsets = [0, 0], sizes = [8, 128], strides = [1, 1]} : vector<8x384xf32> to vector<8x128xf32>
      %61 = vector.broadcast %59 : vector<8x1xf32> to vector<8x128xf32>
      %62 = arith.mulf %61, %60 : vector<8x128xf32>
      %63 = vector.extract_strided_slice %28 {offsets = [0, 7], sizes = [8, 1], strides = [1, 1]} : vector<8x128xf32> to vector<8x1xf32>
      %64 = vector.extract_strided_slice %27 {offsets = [0, 128], sizes = [8, 128], strides = [1, 1]} : vector<8x384xf32> to vector<8x128xf32>
      %65 = vector.broadcast %63 : vector<8x1xf32> to vector<8x128xf32>
      %66 = arith.mulf %65, %64 : vector<8x128xf32>
      %67 = arith.addf %62, %66 : vector<8x128xf32>
      %68 = vector.extract_strided_slice %28 {offsets = [0, 8], sizes = [8, 1], strides = [1, 1]} : vector<8x128xf32> to vector<8x1xf32>
      %69 = vector.extract_strided_slice %27 {offsets = [0, 256], sizes = [8, 128], strides = [1, 1]} : vector<8x384xf32> to vector<8x128xf32>
      %70 = vector.broadcast %68 : vector<8x1xf32> to vector<8x128xf32>
      %71 = arith.mulf %70, %69 : vector<8x128xf32>
      %72 = arith.addf %67, %71 : vector<8x128xf32>
      %c0_26 = arith.constant 0 : index
      %c256 = arith.constant 256 : index
      %73 = vector.load %arg8[%c0_26, %c256] : memref<8x384xf32, #tpu.memory_space<vmem>>, vector<8x128xf32>
      tpu.vector_store %arg8[%c0_26, %c256], %72 {strides = array<i32>} : memref<8x384xf32, #tpu.memory_space<vmem>>, vector<8x128xf32>,
    } else {
    }
    return
  }
  func.func @transform_0(%arg0: i32, %arg1: i32) -> (i32, i32) {
    %c0_i32 = arith.constant 0 : i32
    return %arg0, %arg1 : i32, i32
  }
  func.func @transform_1(%arg0: i32, %arg1: i32) -> (i32, i32) {
    %c0_i32 = arith.constant 0 : i32
    %c0_i32_0 = arith.constant 0 : i32
    %c0_i32_1 = arith.constant 0 : i32
    return %c0_i32, %c0_i32_0 : i32, i32
  }
  func.func @transform_2(%arg0: i32, %arg1: i32) -> (i32, i32) {
    %c0_i32 = arith.constant 0 : i32
    %c0_i32_0 = arith.constant 0 : i32
    %c0_i32_1 = arith.constant 0 : i32
    return %c0_i32, %c0_i32_0 : i32, i32
  }
  func.func @transform_3(%arg0: i32, %arg1: i32) -> (i32, i32) {
    %c0_i32 = arith.constant 0 : i32
    %c0_i32_0 = arith.constant 0 : i32
    %c0_i32_1 = arith.constant 0 : i32
    return %c0_i32, %c0_i32_0 : i32, i32
  }
  func.func @transform_4(%arg0: i32, %arg1: i32) -> (i32, i32) {
    %c0_i32 = arith.constant 0 : i32
    %c0_i32_0 = arith.constant 0 : i32
    return %arg0, %c0_i32 : i32, i32
  }
  func.func @transform_5(%arg0: i32, %arg1: i32) -> (i32, i32) {
    %c0_i32 = arith.constant 0 : i32
    %c0_i32_0 = arith.constant 0 : i32
    return %arg0, %c0_i32 : i32, i32
  }
  func.func @transform_6(%arg0: i32, %arg1: i32) -> (i32, i32) {
    %c0_i32 = arith.constant 0 : i32
    %c0_i32_0 = arith.constant 0 : i32
    return %arg0, %c0_i32 : i32, i32
  }
}

</mosaic_0001>

<bundles_post_ra>
// kernel: tpu_custom_call.1
= control target key start
LH: loop header
LB: loop body
LE: loop exit
PB: predicated region body
PF: predicated region fallthrough
CT: control target
= control target key end

     0   :  { %12 = vsyncpa [#allocation3], 0  ;;  %s1897_s0 = inlined_call_operand.hbm [shape: f32[8,1024], index: 0, kind: input, shape index: {}]   ;;  %s1898_s1 = inlined_call_operand.hbm [shape: bf16[1024,128], index: 1, kind: input, shape index: {}]   ;;  %s1899_s2 = inlined_call_operand.hbm [shape: bf16[128,128], index: 2, kind: input, shape index: {}]   ;;  %s1900_s3 = inlined_call_operand.hbm [shape: bf16[128,384], index: 3, kind: input, shape index: {}]   ;;  %s1901_s4 = inlined_call_operand.vmem [shape: f32[8,128], index: 4, kind: input, shape index: {}]   ;;  %s1902_s5 = inlined_call_operand.hbm [shape: f32[8,128], index: 5, kind: output, shape index: {0}]   ;;  %s1903_s6 = inlined_call_operand.hbm [shape: f32[8,384], index: 6, kind: output, shape index: {1}]  }
   0x1   :  { %13 = vsyncpa [#allocation6], 0 }
   0x2   :  { %14 = vsyncpa [#allocation9], 0 }
   0x3   :  { %15 = vsyncpa [#allocation4], 0 }
   0x4   :  { %16 = vsyncpa [#allocation12], 0  ;;  %s1740_s21 = smov [#allocation5]   ;;  %s1598_s25 = scalar_lea.hbm %s1898_s1, 8192 }
   0x5   :  { %s32_s22 = sshll.u32 %s1740_s21, 4  ;;  %p1599_p0 = scmp.ne.s32.totalorder %s1898_s1, %s1598_s25  ;;  %s33_s22 = int_to_ptr.vmem [resolvable:$true] %s32_s22 }
   0x6   :  { %p1602_p1 = scmp.lt.u32.totalorder %s1598_s25, %s1898_s1 }
   0x8   :  { %p1604_p2 = pnand %p1602_p1, %p1599_p0 }
   0xa   :  { %1607 = shalt.err (!%p1604_p2)
}
   0xb   :  { %s1608_s30 = scalar_lea.vmem %s33_s22, 8192  ;;  %p1613_p4 = scmp.lt.s32.totalorder %s33_s22, %s33_s22 }
   0xc   :  { %p1609_p3 = scmp.ne.s32.totalorder %s33_s22, %s1608_s30  ;;  %p1614_p5 = scmp.lt.s32.totalorder %s1608_s30, %s1608_s30 }
   0xe   :  { %p1615_p6 = por %p1614_p5, %p1613_p4 }
  0x10   :  { %p1616_p7 = pnand %p1615_p6, %p1609_p3 }
  0x12   :  { %1619 = shalt.err (!%p1616_p7)
}
  0x13   :  { %s1741_s7 = smov 64   ;;  %s1742_s8 = smov 4  }
  0x14   :  { %38 = dma.hbm_to_vmem [thread:$0]  %s1898_s1, 8192, %s33_s22, [#allocation6], %s1741_s7, %s1741_s7, %s1742_s8  }
  0x15   :  { %s1743_s11 = smov [#allocation2]   ;;  %s1744_s13 = smov [#allocation7]  }
  0x16   :  { %s23_s12 = sshll.u32 %s1743_s11, 4  ;;  %s44_s14 = sshll.u32 %s1744_s13, 4  ;;  %s24_s12 = int_to_ptr.vmem [resolvable:$true] %s23_s12  ;;  %s45_s14 = int_to_ptr.vmem [resolvable:$true] %s44_s14 }
  0x17   :  { %s1620_s17 = scalar_lea.hbm %s1897_s0, 1024 }
  0x18   :  { %p1621_p8 = scmp.ne.s32.totalorder %s1897_s0, %s1620_s17  ;;  %p1624_p9 = scmp.lt.u32.totalorder %s1620_s17, %s1897_s0 }
  0x1a   :  { %p1626_p10 = pnand %p1624_p9, %p1621_p8 }
  0x1c   :  { %1629 = shalt.err (!%p1626_p10)
}
  0x1d   :  { %s1630_s1 = scalar_lea.vmem %s24_s12, 1024  ;;  %p1635_p12 = scmp.lt.s32.totalorder %s24_s12, %s24_s12 }
  0x1e   :  { %p1631_p11 = scmp.ne.s32.totalorder %s24_s12, %s1630_s1  ;;  %p1636_p13 = scmp.lt.s32.totalorder %s1630_s1, %s1630_s1 }
  0x20   :  { %p1637_p0 = por %p1636_p13, %p1635_p12 }
  0x22   :  { %p1638_p1 = pnand %p1637_p0, %p1631_p11 }
  0x24   :  { %1641 = shalt.err (!%p1638_p1)
}
  0x25   :  { %26 = dma.hbm_to_vmem [thread:$0]  %s1897_s0, 1024, %s24_s12, [#allocation3]  }
  0x26   :  { %s1642_s26 = scalar_lea.hbm %s1899_s2, 1024 }
  0x27   :  { %p1643_p2 = scmp.ne.s32.totalorder %s1899_s2, %s1642_s26  ;;  %p1646_p3 = scmp.lt.u32.totalorder %s1642_s26, %s1899_s2 }
  0x29   :  { %p1648_p4 = pnand %p1646_p3, %p1643_p2 }
  0x2b   :  { %1651 = shalt.err (!%p1648_p4)
}
  0x2c   :  { %s1652_s9 = scalar_lea.vmem %s45_s14, 1024  ;;  %p1657_p6 = scmp.lt.s32.totalorder %s45_s14, %s45_s14 }
  0x2d   :  { %p1653_p5 = scmp.ne.s32.totalorder %s45_s14, %s1652_s9  ;;  %p1658_p7 = scmp.lt.s32.totalorder %s1652_s9, %s1652_s9 }
  0x2f   :  { %p1659_p8 = por %p1658_p7, %p1657_p6 }
  0x31   :  { %p1660_p9 = pnand %p1659_p8, %p1653_p5 }
  0x33   :  { %1663 = shalt.err (!%p1660_p9)
}
  0x34   :  { %50 = dma.hbm_to_vmem [thread:$0]  %s1899_s2, 1024, %s45_s14, [#allocation6], %s1741_s7, %s1741_s7, %s1742_s8  }
  0x35   :  { %s1745_s11 = smov [#allocation8]   ;;  %s1664_s16 = scalar_lea.hbm %s1900_s3, 3072 }
  0x36   :  { %s56_s12 = sshll.u32 %s1745_s11, 4  ;;  %p1665_p10 = scmp.ne.s32.totalorder %s1900_s3, %s1664_s16  ;;  %s57_s12 = int_to_ptr.vmem [resolvable:$true] %s56_s12 }
  0x37   :  { %p1668_p11 = scmp.lt.u32.totalorder %s1664_s16, %s1900_s3 }
  0x39   :  { %p1670_p12 = pnand %p1668_p11, %p1665_p10 }
  0x3b   :  { %1673 = shalt.err (!%p1670_p12)
}
  0x3c   :  { %s1674_s21 = scalar_lea.vmem %s57_s12, 3072  ;;  %p1679_p0 = scmp.lt.s32.totalorder %s57_s12, %s57_s12 }
  0x3d   :  { %p1675_p13 = scmp.ne.s32.totalorder %s57_s12, %s1674_s21  ;;  %p1680_p1 = scmp.lt.s32.totalorder %s1674_s21, %s1674_s21 }
  0x3f   :  { %p1681_p2 = por %p1680_p1, %p1679_p0 }
  0x41   :  { %p1682_p3 = pnand %p1681_p2, %p1675_p13 }
  0x43   :  { %1685 = shalt.err (!%p1682_p3)
}
  0x44   :  { %s1746_s2 = smov 192   ;;  %s1747_s7 = smov 12  }
  0x45   :  { %62 = dma.hbm_to_vmem [thread:$0]  %s1900_s3, 3072, %s57_s12, [#allocation9], %s1746_s2, %s1746_s2, %s1747_s7  }
  0x46   :  { %1730 = dma.done.wait [#allocation3], 1024  }
  0x47   :  { %1731 = vsyncadd [#allocation3], 4294966272 }
  0x48   :  { %1732 = dma.done.wait [#allocation6], 9216  }
  0x49   :  { %1733 = vsyncadd [#allocation6], 4294958080 }
  0x4a   :  { %1734 = dma.done.wait [#allocation9], 3072  }
  0x4b   :  { %1735 = vsyncadd [#allocation9], 4294964224  ;;  %v1494_v0 = vld [vmem:[#allocation5 + $0x40] sm:$0xff]   ;;  %v1498_v4 = vld [vmem:[#allocation5 + $0x48] sm:$0xff]   ;;  %vm1749_vm0 = vmmov 0  }
  0x4c   :  { %v1495_v1 = vld [vmem:[#allocation5 + $0xc0] sm:$0xff]   ;;  %1318 = vmatprep.subr.bf16.mxu0 %v1494_v0  ;;  %v1499_v5 = vld [vmem:[#allocation5 + $0xc8] sm:$0xff]   ;;  %v1502_v8 = vld [vmem:[#allocation5 + $0x50] sm:$0xff]  }
  0x4d   :  { %v1496_v2 = vld [vmem:[#allocation5] sm:$0xff]   ;;  %1340 = vmatprep.subr.bf16.mxu1 %v1495_v1  ;;  %v1500_v6 = vld [vmem:[#allocation5 + $0x8] sm:$0xff]   ;;  %v1503_v9 = vld [vmem:[#allocation5 + $0xd0] sm:$0xff]  }
  0x4e   :  { %v1497_v3 = vld [vmem:[#allocation5 + $0x80] sm:$0xff]   ;;  %1319 = vmatpush3.bf16.msra.mxu0 %v1496_v2  ;;  %v1501_v7 = vld [vmem:[#allocation5 + $0x88] sm:$0xff]   ;;  %v1504_v10 = vld [vmem:[#allocation5 + $0x10] sm:$0xff]  }
  0x4f   :  { %1341 = vmatpush3.bf16.msra.mxu1 %v1497_v3  ;;  %1320 = vmatprep.subr.bf16.mxu0 %v1498_v4  ;;  %v1505_v11 = vld [vmem:[#allocation5 + $0x90] sm:$0xff]   ;;  %v1506_v12 = vld [vmem:[#allocation5 + $0x58] sm:$0xff]   ;;  %v1510_v16 = vld [vmem:[#allocation5 + $0x60] sm:$0xff]  }
  0x50   :  { %1342 = vmatprep.subr.bf16.mxu1 %v1499_v5  ;;  %v1507_v13 = vld [vmem:[#allocation5 + $0xd8] sm:$0xff]   ;;  %v1511_v17 = vld [vmem:[#allocation5 + $0xe0] sm:$0xff]   ;;  %v1514_v20 = vld [vmem:[#allocation5 + $0x68] sm:$0xff]  }
  0x51   :  { %v1508_v14 = vld [vmem:[#allocation5 + $0x18] sm:$0xff]   ;;  %v1512_v18 = vld [vmem:[#allocation5 + $0x20] sm:$0xff]   ;;  %v1515_v21 = vld [vmem:[#allocation5 + $0xe8] sm:$0xff]  }
  0x52   :  { %1321 = vmatpush3.bf16.msra.mxu0 %v1500_v6  ;;  %v1509_v15 = vld [vmem:[#allocation5 + $0x98] sm:$0xff]   ;;  %v1513_v19 = vld [vmem:[#allocation5 + $0xa0] sm:$0xff]   ;;  %v1516_v22 = vld [vmem:[#allocation5 + $0x28] sm:$0xff]  }
  0x53   :  { %1343 = vmatpush3.bf16.msra.mxu1 %v1501_v7  ;;  %1322 = vmatprep.subr.bf16.mxu0 %v1502_v8  ;;  %v1517_v23 = vld [vmem:[#allocation5 + $0xa8] sm:$0xff]   ;;  %v1518_v24 = vld [vmem:[#allocation5 + $0x70] sm:$0xff]   ;;  %v1522_v28 = vld [vmem:[#allocation5 + $0x78] sm:$0xff]  }
  0x54   :  { %1344 = vmatprep.subr.bf16.mxu1 %v1503_v9  ;;  %v1519_v25 = vld [vmem:[#allocation5 + $0xf0] sm:$0xff]   ;;  %v1523_v29 = vld [vmem:[#allocation5 + $0xf8] sm:$0xff]   ;;  %v84_v32 = vld [vmem:[#allocation2 + $0x8] sm:$0xff] }
  0x55   :  { %v1520_v26 = vld [vmem:[#allocation5 + $0x30] sm:$0xff]   ;;  %v1524_v30 = vld [vmem:[#allocation5 + $0x38] sm:$0xff]   ;;  %v83_v34 = vld [vmem:[#allocation2] sm:$0xff]  ;;  %v92_v35 = vpack.c.bf16 %v84_v32, %v84_v32 }
  0x56   :  { %1323 = vmatpush3.bf16.msra.mxu0 %v1504_v10  ;;  %v1521_v27 = vld [vmem:[#allocation5 + $0xb0] sm:$0xff]   ;;  %v1525_v31 = vld [vmem:[#allocation5 + $0xb8] sm:$0xff]   ;;  %v91_v37 = vpack.c.bf16 %v83_v34, %v83_v34  ;;  %v1526_v40 = vld [vmem:[#allocation5 + $0x140] sm:$0xff]  }
  0x57   :  { %1345 = vmatpush3.bf16.msra.mxu1 %v1505_v11  ;;  %1324 = vmatprep.subr.bf16.mxu0 %v1506_v12  ;;  %v86_v33 = vld [vmem:[#allocation2 + $0x18] sm:$0xff]  ;;  %v85_v38 = vld [vmem:[#allocation2 + $0x10] sm:$0xff]  ;;  %v1527_v41 = vld [vmem:[#allocation5 + $0x1c0] sm:$0xff]  }
  0x58   :  { %1346 = vmatprep.subr.bf16.mxu1 %v1507_v13  ;;  %v94_v36 = vpack.c.bf16 %v86_v33, %v86_v33  ;;  %v93_v39 = vpack.c.bf16 %v85_v38, %v85_v38  ;;  %649 = vmatprep.mubr.bf16.mxu0 %v92_v35  ;;  %v1528_v42 = vld [vmem:[#allocation5 + $0x100] sm:$0xff]   ;;  %v1530_v44 = vld [vmem:[#allocation5 + $0x148] sm:$0xff]   ;;  %v1534_v48 = vld [vmem:[#allocation5 + $0x150] sm:$0xff]  }
  0x59   :  { %v1529_v43 = vld [vmem:[#allocation5 + $0x180] sm:$0xff]   ;;  %v1531_v45 = vld [vmem:[#allocation5 + $0x1c8] sm:$0xff]   ;;  %v1535_v49 = vld [vmem:[#allocation5 + $0x1d0] sm:$0xff]  }
  0x5a   :  { %1325 = vmatpush3.bf16.msra.mxu0 %v1508_v14  ;;  %689 = vmatprep.mubr.bf16.mxu1 %v94_v36  ;;  %v1532_v46 = vld [vmem:[#allocation5 + $0x108] sm:$0xff]   ;;  %v1536_v50 = vld [vmem:[#allocation5 + $0x110] sm:$0xff]   ;;  %v1538_v52 = vld [vmem:[#allocation5 + $0x158] sm:$0xff]  }
  0x5b   :  { %1347 = vmatpush3.bf16.msra.mxu1 %v1509_v15  ;;  %1326 = vmatprep.subr.bf16.mxu0 %v1510_v16  ;;  %v1533_v47 = vld [vmem:[#allocation5 + $0x188] sm:$0xff]   ;;  %v1537_v51 = vld [vmem:[#allocation5 + $0x190] sm:$0xff]   ;;  %v1539_v53 = vld [vmem:[#allocation5 + $0x1d8] sm:$0xff]  }
  0x5c   :  { %1348 = vmatprep.subr.bf16.mxu1 %v1511_v17  ;;  %v1540_v54 = vld [vmem:[#allocation5 + $0x118] sm:$0xff]   ;;  %v1542_v56 = vld [vmem:[#allocation5 + $0x160] sm:$0xff]   ;;  %v1546_v60 = vld [vmem:[#allocation5 + $0x168] sm:$0xff]   ;;  %v1748_v17 = vmov 0.0  }
  0x5d   :  { %v1541_v55 = vld [vmem:[#allocation5 + $0x198] sm:$0xff]   ;;  %v1543_v57 = vld [vmem:[#allocation5 + $0x1e0] sm:$0xff]   ;;  %v1547_v61 = vld [vmem:[#allocation5 + $0x1e8] sm:$0xff]  }
  0x5e   :  { %1327 = vmatpush3.bf16.msra.mxu0 %v1512_v18  ;;  %v1544_v58 = vld [vmem:[#allocation5 + $0x120] sm:$0xff]   ;;  %v1548_v62 = vld [vmem:[#allocation5 + $0x128] sm:$0xff]   ;;  %v1550_v0 = vld [vmem:[#allocation5 + $0x170] sm:$0xff]  }
  0x5f   :  { %1349 = vmatpush3.bf16.msra.mxu1 %v1513_v19  ;;  %1328 = vmatprep.subr.bf16.mxu0 %v1514_v20  ;;  %v1545_v59 = vld [vmem:[#allocation5 + $0x1a0] sm:$0xff]   ;;  %v1549_v63 = vld [vmem:[#allocation5 + $0x1a8] sm:$0xff]   ;;  %v1551_v1 = vld [vmem:[#allocation5 + $0x1f0] sm:$0xff]  }
  0x60   :  { %1350 = vmatprep.subr.bf16.mxu1 %v1515_v21  ;;  %v1552_v2 = vld [vmem:[#allocation5 + $0x130] sm:$0xff]   ;;  %v1554_v4 = vld [vmem:[#allocation5 + $0x178] sm:$0xff]   ;;  %v88_v8 = vld [vmem:[#allocation2 + $0x28] sm:$0xff] }
  0x61   :  { %v1553_v3 = vld [vmem:[#allocation5 + $0x1b0] sm:$0xff]   ;;  %v1555_v5 = vld [vmem:[#allocation5 + $0x1f8] sm:$0xff]   ;;  %v96_v10 = vpack.c.bf16 %v88_v8, %v88_v8  ;;  %v87_v12 = vld [vmem:[#allocation2 + $0x20] sm:$0xff] }
  0x62   :  { %1329 = vmatpush3.bf16.msra.mxu0 %v1516_v22  ;;  %v1556_v6 = vld [vmem:[#allocation5 + $0x138] sm:$0xff]   ;;  %v89_v13 = vld [vmem:[#allocation2 + $0x30] sm:$0xff]  ;;  %v95_v14 = vpack.c.bf16 %v87_v12, %v87_v12  ;;  %v1558_v16 = vld [vmem:[#allocation7] sm:$0xff]   ;;  %v1751_v12 = vmov 3  }
  0x63   :  { %1351 = vmatpush3.bf16.msra.mxu1 %v1517_v23  ;;  %1330 = vmatprep.subr.bf16.mxu0 %v1518_v24  ;;  %v1557_v7 = vld [vmem:[#allocation5 + $0x1b8] sm:$0xff]   ;;  %v97_v15 = vpack.c.bf16 %v89_v13, %v89_v13  ;;  %v1559_v18 = vld [vmem:[#allocation7 + $0x8] sm:$0xff]   ;;  %v1560_v19 = vld [vmem:[#allocation7 + $0x10] sm:$0xff]   ;;  %v1752_v13 = vmov 1  }
  0x64   :  { %1352 = vmatprep.subr.bf16.mxu1 %v1519_v25  ;;  %v90_v9 = vld [vmem:[#allocation2 + $0x38] sm:$0xff]  ;;  %v1562_v21 = vld [vmem:[#allocation7 + $0x20] sm:$0xff]   ;;  %v1563_v22 = vld [vmem:[#allocation7 + $0x28] sm:$0xff]   ;;  %1487 = vset.pattern.permute.xlu1 %v1751_v12 }
  0x65   :  { %v98_v11 = vpack.c.bf16 %v90_v9, %v90_v9  ;;  %v1561_v20 = vld [vmem:[#allocation7 + $0x18] sm:$0xff]   ;;  %v1564_v23 = vld [vmem:[#allocation7 + $0x30] sm:$0xff]   ;;  %v1566_v25 = vld [vmem:[#allocation8] ss:$12 sps:$4 sm:$0xff]  }
  0x66   :  { %1331 = vmatpush3.bf16.msra.mxu0 %v1520_v26  ;;  %v1565_v24 = vld [vmem:[#allocation7 + $0x38] sm:$0xff]   ;;  %v1568_v26 = vld [vmem:[#allocation8 + $0x4] ss:$12 sps:$4 sm:$0xff]   ;;  %v1578_v32 = vld [vmem:[#allocation8 + $0x48] ss:$12 sps:$4 sm:$0xff]  }
  0x67   :  { %1353 = vmatpush3.bf16.msra.mxu1 %v1521_v27  ;;  %1332 = vmatprep.subr.bf16.mxu0 %v1522_v28  ;;  %v1572_v27 = vld [vmem:[#allocation8 + $0x1c] ss:$12 sps:$4 sm:$0xff]   ;;  %v1570_v28 = vld [vmem:[#allocation8 + $0x18] ss:$12 sps:$4 sm:$0xff]   ;;  %v1582_v34 = vld [vmem:[#allocation8 + $0x60] ss:$12 sps:$4 sm:$0xff]  }
  0x68   :  { %1354 = vmatprep.subr.bf16.mxu1 %v1523_v29  ;;  %v1576_v29 = vld [vmem:[#allocation8 + $0x34] ss:$12 sps:$4 sm:$0xff]   ;;  %v1584_v33 = vld [vmem:[#allocation8 + $0x64] ss:$12 sps:$4 sm:$0xff]   ;;  %v1588_v35 = vld [vmem:[#allocation8 + $0x7c] ss:$12 sps:$4 sm:$0xff]  }
  0x69   :  { %v1586_v36 = vld [vmem:[#allocation8 + $0x78] ss:$12 sps:$4 sm:$0xff]   ;;  %v1590_v38 = vld [vmem:[#allocation8 + $0x90] ss:$12 sps:$4 sm:$0xff]   ;;  %v1594_v8 = vld [vmem:[#allocation8 + $0xa8] ss:$12 sps:$4 sm:$0xff]  }
  0x6a   :  { %1333 = vmatpush3.bf16.msra.mxu0 %v1524_v30  ;;  %v1574_v30 = vld [vmem:[#allocation8 + $0x30] ss:$12 sps:$4 sm:$0xff]  }
  0x6b   :  { %1355 = vmatpush3.bf16.msra.mxu1 %v1525_v31  ;;  %1362 = vmatprep.subr.bf16.mxu0 %v1526_v40  ;;  %v1580_v31 = vld [vmem:[#allocation8 + $0x4c] ss:$12 sps:$4 sm:$0xff]   ;;  %v1597_v9 = vld [vmem:[#allocation8 + $0xb0] ss:$12 sps:$4 sm:$0xff]  }
  0x6c   :  { %1384 = vmatprep.subr.bf16.mxu1 %v1527_v41 }
  0x6d   :  { %650 = vmatmul.mubr.bf16.vlgmr.msra.gmra.mrb[0].mxu0 %v91_v37  ;;  %v1592_v37 = vld [vmem:[#allocation8 + $0x94] ss:$12 sps:$4 sm:$0xff]  }
  0x6e   :  { %690 = vmatmul.mubr.bf16.vlgmr.msra.gmra.mrb[0].mxu1 %v93_v39  ;;  %1363 = vmatpush3.bf16.msra.mxu0 %v1528_v42 }
  0x6f   :  { %1385 = vmatpush3.bf16.msra.mxu1 %v1529_v43  ;;  %1364 = vmatprep.subr.bf16.mxu0 %v1530_v44 }
  0x70   :  { %1386 = vmatprep.subr.bf16.mxu1 %v1531_v45  ;;  %729 = vmatprep.mubr.bf16.mxu0 %v96_v10  ;;  %v1750_v10 = vmov 0  }
  0x71   :  { %769 = vmatprep.mubr.bf16.mxu1 %v98_v11  ;;  %1485 = vset.pattern.permute.xlu0 %v1750_v10  ;;  %v1133_v11 = vld [vmem:[%s1901_s4] sm:$0xff]  ;;  %s1759_s4 = smov [#allocation10]  }
  0x72   :  { %1365 = vmatpush3.bf16.msra.mxu0 %v1532_v46  ;;  %1136 = vperm.xlu0 %1485, %v1133_v11   ;;  %s1195_s22 = sshll.u32 %s1759_s4, 4  ;;  %s1196_s22 = int_to_ptr.vmem [resolvable:$true] %s1195_s22 }
  0x73   :  { %1387 = vmatpush3.bf16.msra.mxu1 %v1533_v47  ;;  %1366 = vmatprep.subr.bf16.mxu0 %v1534_v48  ;;  %s1686_s23 = scalar_lea.vmem %s1196_s22, 128  ;;  %p1691_p5 = scmp.lt.s32.totalorder %s1196_s22, %s1196_s22 }
  0x74   :  { %1388 = vmatprep.subr.bf16.mxu1 %v1535_v49  ;;  %1154 = vperm.xlu1 %1487, %v1133_v11   ;;  %p1687_p4 = scmp.ne.s32.totalorder %s1196_s22, %s1686_s23  ;;  %p1692_p6 = scmp.lt.s32.totalorder %s1686_s23, %s1686_s23 }
  0x76   :  { %1367 = vmatpush3.bf16.msra.mxu0 %v1536_v50  ;;  %1486 = vset.pattern.permute.xlu0 %v1752_v13  ;;  %p1693_p7 = por %p1692_p6, %p1691_p5 }
  0x77   :  { %1389 = vmatpush3.bf16.msra.mxu1 %v1537_v51  ;;  %1368 = vmatprep.subr.bf16.mxu0 %v1538_v52 }
  0x78   :  { %1390 = vmatprep.subr.bf16.mxu1 %v1539_v53  ;;  %1141 = vperm.xlu0 %1486, %v1133_v11   ;;  %p1694_p8 = pnand %p1693_p7, %p1687_p4 }
  0x7a   :  { %1369 = vmatpush3.bf16.msra.mxu0 %v1540_v54 }
  0x7b   :  { %1391 = vmatpush3.bf16.msra.mxu1 %v1541_v55  ;;  %1370 = vmatprep.subr.bf16.mxu0 %v1542_v56 }
  0x7c   :  { %1392 = vmatprep.subr.bf16.mxu1 %v1543_v57 }
  0x7e   :  { %1371 = vmatpush3.bf16.msra.mxu0 %v1544_v58 }
  0x7f   :  { %1393 = vmatpush3.bf16.msra.mxu1 %v1545_v59  ;;  %1372 = vmatprep.subr.bf16.mxu0 %v1546_v60 }
  0x80   :  { %1394 = vmatprep.subr.bf16.mxu1 %v1547_v61 }
  0x82   :  { %1373 = vmatpush3.bf16.msra.mxu0 %v1548_v62 }
  0x83   :  { %1395 = vmatpush3.bf16.msra.mxu1 %v1549_v63  ;;  %1374 = vmatprep.subr.bf16.mxu0 %v1550_v0  ;;  %v1569_v63 = vld [vmem:[#allocation8 + $0x8] ss:$12 sps:$4 sm:$0xff]  }
  0x84   :  { %1396 = vmatprep.subr.bf16.mxu1 %v1551_v1  ;;  %v1573_v1 = vld [vmem:[#allocation8 + $0x20] ss:$12 sps:$4 sm:$0xff]  }
  0x86   :  { %1375 = vmatpush3.bf16.msra.mxu0 %v1552_v2  ;;  %v1577_v2 = vld [vmem:[#allocation8 + $0x38] ss:$12 sps:$4 sm:$0xff]  }
  0x87   :  { %1397 = vmatpush3.bf16.msra.mxu1 %v1553_v3  ;;  %1376 = vmatprep.subr.bf16.mxu0 %v1554_v4  ;;  %v1581_v3 = vld [vmem:[#allocation8 + $0x50] ss:$12 sps:$4 sm:$0xff]   ;;  %v1585_v4 = vld [vmem:[#allocation8 + $0x68] ss:$12 sps:$4 sm:$0xff]  }
  0x88   :  { %1398 = vmatprep.subr.bf16.mxu1 %v1555_v5  ;;  %v1589_v5 = vld [vmem:[#allocation8 + $0x80] ss:$12 sps:$4 sm:$0xff]  }
  0x8a   :  { %1377 = vmatpush3.bf16.msra.mxu0 %v1556_v6  ;;  %v1593_v6 = vld [vmem:[#allocation8 + $0x98] ss:$12 sps:$4 sm:$0xff]  }
  0x8b   :  { %1399 = vmatpush3.bf16.msra.mxu1 %v1557_v7  ;;  %1424 = vmatprep.subr.bf16.mxu0 %v1748_v17  ;;  %v1596_v7 = vld [vmem:[#allocation8 + $0xac] ss:$12 sps:$4 sm:$0xff]  }
  0x8c   :  { %1052 = vmatprep.subr.bf16.mxu1 %v1568_v26 }
  0x8d   :  { %730 = vmatmul.mubr.bf16.vlgmr.msra.gmra.mrb[4].mxu0 %v95_v14  ;;  %v1753_v14 = vmov 4  }
  0x8e   :  { %770 = vmatmul.mubr.bf16.vlgmr.msra.gmra.mrb[4].mxu1 %v97_v15  ;;  %1425 = vmatpush3.bf16.msra.mxu0 %v1558_v16  ;;  %v1754_v15 = vmov 7   ;;  %v1755_v16 = vmov 6  }
  0x8f   :  { %1426 = vmatprep.subr.bf16.mxu0 %v1748_v17  ;;  %1440 = vmatprep.mubr.msk.bf16.mxu0 %vm1749_vm0, %v1748_v17 }
  0x90   :  { %1053 = vmatpush1.bf16.msra.mxu1 %v1566_v25  ;;  %1084 = vmatprep.mubr.bf16.mxu1 %v1750_v10 }
  0x91   :  { %1054 = vmatprep.subr.bf16.mxu1 %v1572_v27  ;;  %1488 = vset.pattern.permute.xlu1 %v1753_v14 }
  0x92   :  { %1427 = vmatpush3.bf16.msra.mxu0 %v1559_v18  ;;  %1159 = vperm.xlu1 %1488, %v1133_v11   ;;  %v1757_v18 = vmov 2  }
  0x93   :  { %1428 = vmatprep.subr.bf16.mxu0 %v1748_v17  ;;  %1490 = vset.pattern.permute.xlu0 %v1754_v15 }
  0x94   :  { %1055 = vmatpush1.bf16.msra.mxu1 %v1570_v28  ;;  %1177 = vperm.xlu0 %1490, %v1133_v11  }
  0x95   :  { %1056 = vmatprep.subr.bf16.mxu1 %v1576_v29 }
  0x96   :  { %1429 = vmatpush3.bf16.msra.mxu0 %v1560_v19  ;;  %1489 = vset.pattern.permute.xlu1 %v1755_v16  ;;  %v1758_v19 = vmov 5  }
  0x97   :  { %1430 = vmatprep.subr.bf16.mxu0 %v1748_v17  ;;  %1172 = vperm.xlu1 %1489, %v1133_v11  }
  0x98   :  { %1057 = vmatpush1.bf16.msra.mxu1 %v1574_v30 }
  0x99   :  { %1058 = vmatprep.subr.bf16.mxu1 %v1580_v31 }
  0x9a   :  { %1431 = vmatpush3.bf16.msra.mxu0 %v1561_v20 }
  0x9b   :  { %1432 = vmatprep.subr.bf16.mxu0 %v1748_v17  ;;  %1491 = vset.pattern.permute.xlu1 %v1757_v18 }
  0x9c   :  { %1059 = vmatpush1.bf16.msra.mxu1 %v1578_v32  ;;  %1147 = vperm.xlu1 %1491, %v1133_v11  }
  0x9d   :  { %1060 = vmatprep.subr.bf16.mxu1 %v1584_v33 }
  0x9e   :  { %1433 = vmatpush3.bf16.msra.mxu0 %v1562_v21 }
  0x9f   :  { %1434 = vmatprep.subr.bf16.mxu0 %v1748_v17 }
  0xa0   :  { %1061 = vmatpush1.bf16.msra.mxu1 %v1582_v34  ;;  %1492 = vset.pattern.permute.xlu1 %v1758_v19 }
  0xa1   :  { %1062 = vmatprep.subr.bf16.mxu1 %v1588_v35  ;;  %1165 = vperm.xlu1 %1492, %v1133_v11  }
  0xa2   :  { %1435 = vmatpush3.bf16.msra.mxu0 %v1563_v22 }
  0xa3   :  { %1436 = vmatprep.subr.bf16.mxu0 %v1748_v17 }
  0xa4   :  { %1063 = vmatpush1.bf16.msra.mxu1 %v1586_v36 }
  0xa5   :  { %1064 = vmatprep.subr.bf16.mxu1 %v1592_v37 }
  0xa6   :  { %1437 = vmatpush3.bf16.msra.mxu0 %v1564_v23 }
  0xa7   :  { %1438 = vmatprep.subr.bf16.mxu0 %v1748_v17 }
  0xa8   :  { %1065 = vmatpush1.bf16.msra.mxu1 %v1590_v38 }
  0xa9   :  { %1066 = vmatprep.subr.bf16.mxu1 %v1596_v7 }
  0xaa   :  { %1439 = vmatpush3.bf16.msra.mxu0 %v1565_v24 }
  0xab   :  { %1444 = vmatprep.subr.bf16.mxu0 %v1748_v17 }
  0xac   :  { %1067 = vmatpush1.bf16.msra.mxu1 %v1594_v8 }
 0x140   :  { %v1334_v39 = vpop.f32.mrb[0].mxu0 }
 0x141   :  { %v1356_v40 = vpop.f32.mrb[0].mxu1  ;;  %v1335_v41 = vpop.f32.mrb[1].mxu0 }
 0x142   :  { %v1357_v42 = vpop.f32.mrb[1].mxu1  ;;  %v1336_v43 = vadd.f32 %v1335_v41, %v1334_v39  ;;  %v1337_v45 = vpop.f32.mrb[2].mxu0 }
 0x143   :  { %v1358_v44 = vadd.f32 %v1357_v42, %v1356_v40  ;;  %v1359_v46 = vpop.f32.mrb[2].mxu1  ;;  %v1338_v47 = vpop.f32.mrb[3].mxu0 }
 0x144   :  { %v1360_v48 = vpop.f32.mrb[3].mxu1 }
 0x145   :  { %v692_v49 = vadd.f32 %v1358_v44, %v1336_v43 }
 0x160   :  { %v1378_v50 = vpop.f32.mrb[4].mxu0 }
 0x161   :  { %v1400_v51 = vpop.f32.mrb[4].mxu1  ;;  %v1379_v52 = vpop.f32.mrb[5].mxu0 }
 0x162   :  { %v1380_v53 = vadd.f32 %v1379_v52, %v1378_v50  ;;  %v1401_v54 = vpop.f32.mrb[5].mxu1  ;;  %v1381_v55 = vpop.f32.mrb[6].mxu0 }
 0x163   :  { %v1402_v56 = vadd.f32 %v1401_v54, %v1400_v51  ;;  %v1403_v57 = vpop.f32.mrb[6].mxu1  ;;  %v1382_v58 = vpop.f32.mrb[7].mxu0 }
 0x164   :  { %v732_v59 = vadd.f32 %v1380_v53, %v692_v49  ;;  %v1404_v60 = vpop.f32.mrb[7].mxu1 }
 0x166   :  { %v772_v61 = vadd.f32 %v1402_v56, %v732_v59 }
 0x168   :  { %v783_v62 = vmax.f32 %v772_v61, 0.0 }
 0x16a   :  { %v785_v0 = vpack.c.bf16 %v783_v62, %v783_v62  ;;  %784 = vst [vmem:[#allocation10] sm:$0xff] %v783_v62 }
 0x16c   :  { %1441 = vmatmul.mubr.bf16.vlgmr.msra.gmra.mrb[8].mxu0 %v785_v0 }
 0x16d   :  { %1445 = vmatpush3.bf16.msra.mxu0 %v1569_v63  ;;  %1460 = vmatprep.mubr.msk.bf16.mxu0 %vm1749_vm0, %v1748_v17 }
 0x16e   :  { %1446 = vmatprep.subr.bf16.mxu0 %v1748_v17 }
 0x171   :  { %1447 = vmatpush3.bf16.msra.mxu0 %v1573_v1 }
 0x172   :  { %1448 = vmatprep.subr.bf16.mxu0 %v1748_v17 }
 0x175   :  { %1449 = vmatpush3.bf16.msra.mxu0 %v1577_v2 }
 0x176   :  { %1450 = vmatprep.subr.bf16.mxu0 %v1748_v17 }
 0x179   :  { %1451 = vmatpush3.bf16.msra.mxu0 %v1581_v3 }
 0x17a   :  { %1452 = vmatprep.subr.bf16.mxu0 %v1748_v17 }
 0x17d   :  { %1453 = vmatpush3.bf16.msra.mxu0 %v1585_v4 }
 0x17e   :  { %1454 = vmatprep.subr.bf16.mxu0 %v1748_v17 }
 0x181   :  { %1455 = vmatpush3.bf16.msra.mxu0 %v1589_v5 }
 0x182   :  { %1456 = vmatprep.subr.bf16.mxu0 %v1748_v17 }
 0x185   :  { %1457 = vmatpush3.bf16.msra.mxu0 %v1593_v6 }
 0x186   :  { %1458 = vmatprep.subr.bf16.mxu0 %v1748_v17  ;;  %v1756_v17 = vmov 8  }
 0x187   :  { %1493 = vset.pattern.permute.xlu0 %v1756_v17 }
 0x188   :  { %1183 = vperm.xlu0 %1493, %v1133_v11  }
 0x189   :  { %1459 = vmatpush3.bf16.msra.mxu0 %v1597_v9 }
 0x23f   :  { %v884_v20 = vpop.f32.mrb[8].mxu0 }
 0x240   :  { %v890_v21 = vmax.f32 %v884_v20, 0.0  ;;  %v1442_v22 = vpop.f32.mrb[9].mxu0 }
 0x241   :  { %v887_v23 = vpop.f32.mrb[10].mxu0 }
 0x242   :  { %v891_v24 = vpack.c.bf16 %v890_v21, %v890_v21  ;;  %v1443_v25 = vpop.f32.mrb[11].mxu0 }
 0x244   :  { %1085 = vmatmul.mubr.bf16.vlgmr.msra.gmra.mrb[8].mxu1 %v891_v24  ;;  %1461 = vmatmul.mubr.bf16.vlgmr.msra.gmra.mrb[12].mxu0 %v891_v24 }
 0x245   :  { %1697 = shalt.err (!%p1694_p8)
}
 0x246   :  { %s1698_s26 = scalar_lea.hbm %s1902_s5, 128 }
 0x247   :  { %p1699_p9 = scmp.ne.s32.totalorder %s1902_s5, %s1698_s26  ;;  %p1702_p10 = scmp.lt.u32.totalorder %s1698_s26, %s1902_s5 }
 0x249   :  { %p1704_p11 = pnand %p1702_p10, %p1699_p9 }
 0x24b   :  { %1707 = shalt.err (!%p1704_p11)
}
 0x24c   :  { %1198 = dma.vmem_to_hbm [thread:$0]  %s1196_s22, 128, %s1902_s5, [#allocation4]   ;;  %v1155_v26 = vpop.permute.xlu1 %1154  ;;  %v1137_v28 = vpop.permute.xlu0 %1136 }
 0x24d   :  { %s1760_s5 = smov [#allocation11]  }
 0x24e   :  { %s1205_s10 = sshll.u32 %s1760_s5, 4  ;;  %s1206_s10 = int_to_ptr.vmem [resolvable:$true] %s1205_s10 }
 0x24f   :  { %s1708_s11 = scalar_lea.vmem %s1206_s10, 384  ;;  %p1713_p13 = scmp.lt.s32.totalorder %s1206_s10, %s1206_s10 }
 0x250   :  { %v1160_v27 = vpop.permute.xlu1 %1159  ;;  %v1142_v30 = vpop.permute.xlu0 %1141  ;;  %p1709_p12 = scmp.ne.s32.totalorder %s1206_s10, %s1708_s11  ;;  %p1714_p0 = scmp.lt.s32.totalorder %s1708_s11, %s1708_s11 }
 0x252   :  { %p1715_p1 = por %p1714_p0, %p1713_p13 }
 0x254   :  { %v1173_v29 = vpop.permute.xlu1 %1172  ;;  %v1178_v32 = vpop.permute.xlu0 %1177  ;;  %p1716_p2 = pnand %p1715_p1, %p1709_p12 }
 0x258   :  { %v1148_v31 = vpop.permute.xlu1 %1147  ;;  %v1184_v34 = vpop.permute.xlu0 %1183 }
 0x25c   :  { %v1166_v33 = vpop.permute.xlu1 %1165 }
 0x317   :  { %v1086_v35 = vpop.f32.mrb[8].mxu1  ;;  %v1127_v36 = vpop.f32.mrb[12].mxu0 }
 0x318   :  { %v1139_v37 = vmul.f32 %v1137_v28, %v1086_v35  ;;  %v1157_v38 = vmul.f32 %v1155_v26, %v1086_v35  ;;  %v1175_v39 = vmul.f32 %v1173_v29, %v1086_v35  ;;  %v1088_v40 = vpop.f32.mrb[9].mxu1  ;;  %v1462_v41 = vpop.f32.mrb[13].mxu0  ;;  %v1150_v49 = vmul.f32 %v1148_v31, %v1127_v36 }
 0x319   :  { %v1144_v42 = vmul.f32 %v1142_v30, %v1088_v40  ;;  %v1162_v43 = vmul.f32 %v1160_v27, %v1088_v40  ;;  %v1090_v44 = vpop.f32.mrb[10].mxu1  ;;  %v1130_v45 = vpop.f32.mrb[14].mxu0  ;;  %v1180_v46 = vmul.f32 %v1178_v32, %v1088_v40  ;;  %v1168_v50 = vmul.f32 %v1166_v33, %v1127_v36 }
 0x31a   :  { %v1091_v47 = vpop.f32.mrb[11].mxu1  ;;  %v1463_v48 = vpop.f32.mrb[15].mxu0  ;;  %v1186_v53 = vmul.f32 %v1184_v34, %v1127_v36 }
 0x31b   :  { %v1145_v51 = vadd.f32 %v1144_v42, %v1139_v37  ;;  %v1163_v52 = vadd.f32 %v1162_v43, %v1157_v38  ;;  %v1181_v54 = vadd.f32 %v1180_v46, %v1175_v39 }
 0x31d   :  { %v1151_v55 = vadd.f32 %v1150_v49, %v1145_v51  ;;  %v1169_v56 = vadd.f32 %v1168_v50, %v1163_v52  ;;  %v1187_v57 = vadd.f32 %v1186_v53, %v1181_v54 }
 0x31f   :  { %1152 = vst [vmem:[#allocation11] sm:$0xff] %v1151_v55  ;;  %1170 = vst [vmem:[#allocation11 + $0x8] sm:$0xff] %v1169_v56 }
 0x320   :  { %1188 = vst [vmem:[#allocation11 + $0x10] sm:$0xff] %v1187_v57 }
 0x321   :  { %1719 = shalt.err (!%p1716_p2)
}
 0x322   :  { %s1720_s15 = scalar_lea.hbm %s1903_s6, 384 }
 0x323   :  { %p1721_p3 = scmp.ne.s32.totalorder %s1903_s6, %s1720_s15  ;;  %p1724_p4 = scmp.lt.u32.totalorder %s1720_s15, %s1903_s6 }
 0x325   :  { %p1726_p5 = pnand %p1724_p4, %p1721_p3 }
 0x327   :  { %1729 = shalt.err (!%p1726_p5)
}
 0x328   :  { %1208 = dma.vmem_to_hbm [thread:$0]  %s1206_s10, 384, %s1903_s6, [#allocation12]  }
 0x329   :  { %1736 = dma.done.wait [#allocation4], 128  }
 0x32a   :  { %1737 = vsyncadd [#allocation4], 4294967168 }
 0x32b   :  { %1738 = dma.done.wait [#allocation12], 384  }
 0x32c   :  { %1739 = vsyncadd [#allocation12], 4294966912 }
 0x32d   :  { %1215 = vsyncpa [#allocation3], 1 }
 0x32e   :  { %1216 = vsyncpa [#allocation6], 1 }
 0x32f   :  { %1217 = vsyncpa [#allocation9], 1 }
 0x330   :  { %1218 = vsyncpa [#allocation4], 1 }
 0x331   :  { %1219 = vsyncpa [#allocation12], 1 }

</bundles_post_ra>
